<compile_context>
chip_gen: v6e
topology: v6e:2x2x1
jax: 0.10.0
libtpu: 0.0.40
codegen_flags: <defaults>
</compile_context>

<pallas_src>
import functools

import jax
import jax.numpy as jnp
import numpy as np
from jax.experimental import pallas as pl
from jax.experimental.pallas import tpu as pltpu


def _round_up(x, m):
    return ((x + m - 1) // m) * m


def _dtype_bytes(dt):
    return jnp.dtype(dt).itemsize


def prepare_memory_bank(features, *, block_n=1024, compute_dtype=jnp.bfloat16):
    """Transpose/cast/pad the cluster bank once; cache the result across calls.

    The ClusterMemory bank only changes in the (backward-side) momentum update,
    so this host-side transform should NOT be paid on every forward call.
    Returns a dict consumed by cluster_memory_forward(prepared_bank=...).
    """
    N, D = features.shape
    tn = min(_round_up(block_n, 128), _round_up(N, 128))
    Np = _round_up(N, tn)
    feat_t = (jnp.zeros((D, Np), compute_dtype)
              .at[:, :N].set(features.astype(jnp.float32).T.astype(compute_dtype)))
    return {"feat_t": feat_t, "n_valid": N, "tn": tn,
            "compute_dtype": jnp.dtype(compute_dtype)}


def _cluster_memory_kernel(x_ref, ft_ref, tgt_ref, *refs,
                           n_valid, n_padded, inv_temp,
                           emit_logits, static_max):
    # x_ref:   (TB, D)  float32        raw inputs (same block for every N step)
    # ft_ref:  (D, TN)  compute_dtype  transposed memory-bank tile (streamed)
    # tgt_ref: (TB, 1)  int32          cluster ids
    # outputs: rowloss (TB,1) f32 [, logits (TB,TN) logits_dtype]
    # scratch: m_sc, l_sc, p_sc (TB,1) f32 ; xn_sc (TB,D) compute_dtype
    if emit_logits:
        rowloss_ref, logits_ref, m_sc, l_sc, p_sc, xn_sc = refs
    else:
        rowloss_ref, m_sc, l_sc, p_sc, xn_sc = refs
        logits_ref = None

    j = pl.program_id(1)
    nj = pl.num_programs(1)

    @pl.when(j == 0)
    def _init():
        # F.normalize(x, dim=1): x / max(||x||, 1e-12) == x * rsqrt(max(||x||^2, 1e-24))
        x = x_ref[...].astype(jnp.float32)
        sq = jnp.sum(x * x, axis=1, keepdims=True)
        inv_norm = jax.lax.rsqrt(jnp.maximum(sq, 1e-24))
        # Fold 1/temp into x once (O(B*D)); store already in the compute dtype so
        # interior steps do no reload/cast of a f32 copy.
        xn_sc[...] = (x * (inv_norm * inv_temp)).astype(xn_sc.dtype)
        if not static_max:
            m_sc[...] = jnp.full_like(m_sc, -1e30)
        l_sc[...] = jnp.zeros_like(l_sc)
        p_sc[...] = jnp.zeros_like(p_sc)

    xn = xn_sc[...]                                # (TB, D), compute dtype
    ft = ft_ref[...]                               # (D, TN), MXU-ready (no transpose)
    s = jnp.dot(xn, ft, preferred_element_type=jnp.float32)   # (TB, TN) f32

    tb, tn = s.shape
    # Local lane index only; all comparisons use per-row/step SCALAR offsets so
    # there is no per-element column-index add per step.
    local_col = jax.lax.broadcasted_iota(jnp.int32, (tb, tn), 1)

    if n_padded != n_valid:
        # Padded memory-bank columns exist only in the last N tile; on interior
        # tiles the scalar limit >= tn so the select keeps everything (one
        # vcmp+vsel, no add). When N is a tile multiple this block vanishes.
        s = jnp.where(local_col < (n_valid - j * tn), s, -1e30)

    if emit_logits:
        logits_ref[...] = s.astype(logits_ref.dtype)

    # Accumulate the target logit via compare+select against (target - j*tn).
    tgt_local = tgt_ref[...] - j * tn              # (TB, 1) int32
    p_sc[...] += jnp.sum(jnp.where(local_col == tgt_local, s, 0.0),
                         axis=-1, keepdims=True)

    if static_max:
        # Unit-norm bank rows and unit-norm x => |logit| <= 1/temp, so a static
        # max bound is safe: drop the running max, alpha rescale and XLU max.
        l_sc[...] += jnp.sum(jnp.exp(s - inv_temp), axis=-1, keepdims=True)
    else:
        # Online softmax (streaming logsumexp) over the N axis.
        m_prev = m_sc[...]
        m_new = jnp.maximum(m_prev, jnp.max(s, axis=-1, keepdims=True))
        alpha = jnp.exp(m_prev - m_new)
        l_sc[...] = alpha * l_sc[...] + jnp.sum(jnp.exp(s - m_new),
                                                axis=-1, keepdims=True)
        m_sc[...] = m_new

    @pl.when(j == nj - 1)
    def _finalize():
        if static_max:
            rowloss_ref[...] = (inv_temp + jnp.log(l_sc[...])) - p_sc[...]
        else:
            rowloss_ref[...] = (m_sc[...] + jnp.log(l_sc[...])) - p_sc[...]


def cluster_memory_forward(inputs, features=None, targets=None, temp=0.05, *,
                           prepared_bank=None,
                           block_b=512, block_n=1024,
                           compute_dtype=jnp.bfloat16,
                           logits_dtype=jnp.float32,
                           return_logits=False,
                           assume_unit_norm_bank=False):
    """Pallas implementation of ClusterMemory.forward (core CM path).

    inputs:   (B, D) float32 raw features (normalized inside the kernel)
    features: (N, D) float32 cluster memory bank (ignored if prepared_bank given)
    targets:  (B,)   int32 cluster ids
    prepared_bank: output of prepare_memory_bank(features, ...) -- pass this to
              avoid re-paying the bank transpose/cast on every forward call.
    assume_unit_norm_bank: enable the static-max softmax (only valid when the
              bank rows are unit-norm, as after the momentum+renorm update).
    returns:  loss scalar           (return_logits=False)
              (loss, logits (B,N))  (return_logits=True; logits already /temp)
    """
    B, D = inputs.shape

    if prepared_bank is None:
        assert features is not None
        prepared_bank = prepare_memory_bank(features, block_n=block_n,
                                            compute_dtype=compute_dtype)
    feat_t = prepared_bank["feat_t"]
    N = prepared_bank["n_valid"]
    tn = prepared_bank["tn"]
    compute_dtype = prepared_bank["compute_dtype"]
    Dp, Np = feat_t.shape
    assert Dp == D and Np % tn == 0

    # B tile: multiple of 8 (f32 sublanes); take as much of B as fits block_b so
    # the bank is re-streamed from HBM as few times as possible.
    tb = _round_up(min(block_b, _round_up(B, 8)), 8)
    Bp = _round_up(B, tb)

    x_p = jnp.zeros((Bp, D), jnp.float32).at[:B].set(inputs.astype(jnp.float32))
    tgt_p = jnp.zeros((Bp, 1), jnp.int32).at[:B, 0].set(targets.astype(jnp.int32))

    grid = (Bp // tb, Np // tn)

    kernel = functools.partial(
        _cluster_memory_kernel,
        n_valid=N, n_padded=Np, inv_temp=float(1.0 / temp),
        emit_logits=return_logits, static_max=assume_unit_norm_bank)

    in_specs = [
        pl.BlockSpec((tb, D), lambda i, j: (i, 0)),   # inputs (resident across N)
        pl.BlockSpec((D, tn), lambda i, j: (0, j)),   # features.T tile (streamed)
        pl.BlockSpec((tb, 1), lambda i, j: (i, 0)),   # targets
    ]
    rowloss_shape = jax.ShapeDtypeStruct((Bp, 1), jnp.float32)
    rowloss_spec = pl.BlockSpec((tb, 1), lambda i, j: (i, 0))

    if return_logits:
        out_shape = (rowloss_shape, jax.ShapeDtypeStruct((Bp, Np), logits_dtype))
        out_specs = (rowloss_spec, pl.BlockSpec((tb, tn), lambda i, j: (i, j)))
    else:
        out_shape = rowloss_shape
        out_specs = rowloss_spec

    scratch_shapes = [
        pltpu.VMEM((tb, 1), jnp.float32),       # running max
        pltpu.VMEM((tb, 1), jnp.float32),       # running sum
        pltpu.VMEM((tb, 1), jnp.float32),       # running picked (target logit)
        pltpu.VMEM((tb, D), compute_dtype),     # normalized, 1/temp-scaled x
    ]

    # VMEM limit from the actual buffer budget (double-buffered tiles + scratch),
    # padded to lane/sublane granularity, with headroom. Portable to v7x (64 MiB).
    lane, cbytes = 128, _dtype_bytes(compute_dtype)
    d_lanes = _round_up(D, lane)
    budget = (2 * D * tn * cbytes                       # bank tile x2
              + 2 * tb * d_lanes * 4                    # x tile x2 (f32)
              + 2 * tb * lane * 4                       # targets x2 (lane-padded)
              + 2 * tb * lane * 4                       # rowloss x2
              + tb * d_lanes * cbytes                   # xn scratch
              + 3 * tb * lane * 4)                      # m/l/p scratch
    if return_logits:
        budget += 2 * tb * tn * _dtype_bytes(logits_dtype)
    vmem_limit = int(min(max(1.5 * budget + (2 << 20), 16 << 20), 64 << 20))

    outs = pl.pallas_call(
        kernel,
        grid=grid,
        in_specs=in_specs,
        out_specs=out_specs,
        out_shape=out_shape,
        scratch_shapes=scratch_shapes,
        compiler_params=pltpu.CompilerParams(
            dimension_semantics=("parallel", "arbitrary"),
            vmem_limit_bytes=vmem_limit),
    )(x_p, feat_t, tgt_p)

    if return_logits:
        rowloss, logits = outs
        loss = jnp.mean(rowloss[:B, 0])
        return loss, logits[:B, :N]
    rowloss = outs
    return jnp.mean(rowloss[:B, 0])


def _reference_forward(inputs, features, targets, temp=0.05):
    x = inputs / jnp.maximum(jnp.linalg.norm(inputs, axis=1, keepdims=True), 1e-12)
    logits = (x @ features.T) / temp
    lse = jax.scipy.special.logsumexp(logits, axis=1)
    picked = logits[jnp.arange(logits.shape[0]), targets]
    return jnp.mean(lse - picked), logits


if __name__ == "__main__":
    temp = 0.05
    key = jax.random.PRNGKey(0)

    def make_case(k, B, D, N):
        k_in, k_feat, k_tgt = jax.random.split(k, 3)
        x = jax.random.normal(k_in, (B, D), dtype=jnp.float32)
        # The module registers a zero bank; fill with L2-normalized centroids
        # (what the bank looks like after the momentum+renorm update).
        f = jax.random.normal(k_feat, (N, D), dtype=jnp.float32)
        f = f / jnp.linalg.norm(f, axis=1, keepdims=True)
        t = jax.random.randint(k_tgt, (B,), 0, N, dtype=jnp.int32)
        return x, f, t

    k1, k2 = jax.random.split(key)

    # Case 1: tiny single-tile case, f32 compute, tight check (N padded to 128 lanes).
    inputs, features, targets = make_case(k1, 8, 32, 16)
    loss, logits = cluster_memory_forward(
        inputs, features, targets, temp=temp,
        compute_dtype=jnp.float32, return_logits=True)
    loss = jax.block_until_ready(loss)
    logits = jax.block_until_ready(logits)
    ref_loss, ref_logits = _reference_forward(inputs, features, targets, temp=temp)
    assert np.allclose(np.asarray(logits), np.asarray(ref_logits),
                       rtol=1e-4, atol=1e-4), "case1 logits mismatch"
    assert np.allclose(float(loss), float(ref_loss),
                       rtol=1e-4, atol=1e-4), "case1 loss mismatch"

    # Case 2: multi-tile over B and N with a ragged last N tile (masking path),
    # f32 compute, using a pre-prepared (cached) bank.
    inputs2, features2, targets2 = make_case(k2, 24, 32, 300)
    bank_f32 = prepare_memory_bank(features2, block_n=128,
                                   compute_dtype=jnp.float32)
    loss2, logits2 = cluster_memory_forward(
        inputs2, None, targets2, temp=temp,
        prepared_bank=bank_f32, block_b=8, return_logits=True)
    loss2 = jax.block_until_ready(loss2)
    logits2 = jax.block_until_ready(logits2)
    ref_loss2, ref_logits2 = _reference_forward(inputs2, features2, targets2, temp=temp)
    assert np.allclose(np.asarray(logits2), np.asarray(ref_logits2),
                       rtol=1e-4, atol=1e-4), "case2 logits mismatch"
    assert np.allclose(float(loss2), float(ref_loss2),
                       rtol=1e-4, atol=1e-4), "case2 loss mismatch"

    # Case 3: default fast path — cached bf16 bank, large B tile, loss-only,
    # static-max online softmax (bank rows are unit-norm here).
    bank_bf16 = prepare_memory_bank(features2, block_n=128,
                                    compute_dtype=jnp.bfloat16)
    loss3 = cluster_memory_forward(
        inputs2, None, targets2, temp=temp,
        prepared_bank=bank_bf16, assume_unit_norm_bank=True)
    loss3 = jax.block_until_ready(loss3)
    assert abs(float(loss3) - float(ref_loss2)) < 0.25 + 0.02 * abs(float(ref_loss2)), \
        "case3 bf16 loss out of tolerance"

    # Reuse of the cached bank across calls (the whole point of prepare_memory_bank).
    loss3b = cluster_memory_forward(
        inputs2, None, targets2, temp=temp,
        prepared_bank=bank_bf16, assume_unit_norm_bank=True)
    loss3b = jax.block_until_ready(loss3b)
    assert np.allclose(float(loss3), float(loss3b)), "cached-bank reuse mismatch"

    print("KERNEL_OK")
</pallas_src>

<mosaic_0001>
module attributes {stable_mosaic.version = 11 : i64} {
  func.func @_cluster_memory_kernel(%arg0: i32, %arg1: i32, %arg2: memref<8x32xf32, #tpu.memory_space<vmem>>, %arg3: memref<32x128xf32, #tpu.memory_space<vmem>>, %arg4: memref<8x1xi32, #tpu.memory_space<vmem>>, %arg5: memref<8x1xf32, #tpu.memory_space<vmem>>, %arg6: memref<8x128xf32, #tpu.memory_space<vmem>>, %arg7: memref<8x1xf32, #tpu.memory_space<vmem>>, %arg8: memref<8x1xf32, #tpu.memory_space<vmem>>, %arg9: memref<8x1xf32, #tpu.memory_space<vmem>>, %arg10: memref<8x32xf32, #tpu.memory_space<vmem>>) attributes {dimension_semantics = [#tpu.dimension_semantics<parallel>, #tpu.dimension_semantics<arbitrary>], iteration_bounds = array<i64: 1, 1>, scalar_prefetch = 0 : i64, scratch_operands = 4 : i64, tpu.core_type = #tpu.core_type<tc>, window_params = [{transform_indices = @transform_0, window_bounds = array<i64: 8, 32>}, {transform_indices = @transform_1, window_bounds = array<i64: 32, 128>}, {transform_indices = @transform_2, window_bounds = array<i64: 8, 1>}, {transform_indices = @transform_3, window_bounds = array<i64: 8, 1>}, {transform_indices = @transform_4, window_bounds = array<i64: 8, 128>}]} {
    %c0_i32 = arith.constant 0 : i32
    %0 = arith.cmpi eq, %arg1, %c0_i32 : i32
    %1 = arith.extui %0 : i1 to i32
    %c0_i32_0 = arith.constant 0 : i32
    %2 = arith.cmpi ne, %1, %c0_i32_0 : i32
    scf.if %2 {
      %c0_28 = arith.constant 0 : index
      %c0_29 = arith.constant 0 : index
      %46 = vector.load %arg2[%c0_28, %c0_29] : memref<8x32xf32, #tpu.memory_space<vmem>>, vector<8x32xf32>
      %47 = arith.mulf %46, %46 : vector<8x32xf32>
      %cst_30 = arith.constant dense<0.000000e+00> : vector<8xf32>
      %48 = vector.multi_reduction <add>, %47, %cst_30 [1] : vector<8x32xf32> to vector<8xf32>
      %49 = vector.shape_cast %48 : vector<8xf32> to vector<8x1xf32>
      %cst_31 = arith.constant 1.000000e-24 : f32
      %50 = vector.broadcast %cst_31 : f32 to vector<8x1xf32>
      %51 = arith.maximumf %49, %50 : vector<8x1xf32>
      %52 = math.rsqrt %51 : vector<8x1xf32>
      %cst_32 = arith.constant 2.000000e+01 : f32
      %53 = vector.broadcast %cst_32 : f32 to vector<8x1xf32>
      %54 = arith.mulf %52, %53 : vector<8x1xf32>
      %55 = vector.broadcast %54 : vector<8x1xf32> to vector<8x32xf32>
      %56 = arith.mulf %46, %55 : vector<8x32xf32>
      %c0_33 = arith.constant 0 : index
      %c0_34 = arith.constant 0 : index
      %57 = vector.load %arg10[%c0_33, %c0_34] : memref<8x32xf32, #tpu.memory_space<vmem>>, vector<8x32xf32>
      tpu.vector_store %arg10[%c0_33, %c0_34], %56 {strides = array<i32>} : memref<8x32xf32, #tpu.memory_space<vmem>>, vector<8x32xf32>,
      %cst_35 = arith.constant -1.000000e+30 : f32
      %58 = vector.broadcast %cst_35 : f32 to vector<8x1xf32>
      %c0_36 = arith.constant 0 : index
      %c0_37 = arith.constant 0 : index
      %59 = vector.load %arg7[%c0_36, %c0_37] : memref<8x1xf32, #tpu.memory_space<vmem>>, vector<8x1xf32>
      tpu.vector_store %arg7[%c0_36, %c0_37], %58 {strides = array<i32>} : memref<8x1xf32, #tpu.memory_space<vmem>>, vector<8x1xf32>,
      %cst_38 = arith.constant 0.000000e+00 : f32
      %60 = vector.broadcast %cst_38 : f32 to vector<8x1xf32>
      %c0_39 = arith.constant 0 : index
      %c0_40 = arith.constant 0 : index
      %61 = vector.load %arg8[%c0_39, %c0_40] : memref<8x1xf32, #tpu.memory_space<vmem>>, vector<8x1xf32>
      tpu.vector_store %arg8[%c0_39, %c0_40], %60 {strides = array<i32>} : memref<8x1xf32, #tpu.memory_space<vmem>>, vector<8x1xf32>,
      %cst_41 = arith.constant 0.000000e+00 : f32
      %62 = vector.broadcast %cst_41 : f32 to vector<8x1xf32>
      %c0_42 = arith.constant 0 : index
      %c0_43 = arith.constant 0 : index
      %63 = vector.load %arg9[%c0_42, %c0_43] : memref<8x1xf32, #tpu.memory_space<vmem>>, vector<8x1xf32>
      tpu.vector_store %arg9[%c0_42, %c0_43], %62 {strides = array<i32>} : memref<8x1xf32, #tpu.memory_space<vmem>>, vector<8x1xf32>,
    } else {
    }
    %c0 = arith.constant 0 : index
    %c0_1 = arith.constant 0 : index
    %3 = vector.load %arg10[%c0, %c0_1] : memref<8x32xf32, #tpu.memory_space<vmem>>, vector<8x32xf32>
    %c0_2 = arith.constant 0 : index
    %c0_3 = arith.constant 0 : index
    %4 = vector.load %arg3[%c0_2, %c0_3] : memref<32x128xf32, #tpu.memory_space<vmem>>, vector<32x128xf32>
    %cst = arith.constant dense<0.000000e+00> : vector<8x128xf32>
    %5 = tpu.matmul %3, %4, %cst {dimension_numbers = #tpu.dot_dimension_numbers<[1], [0], [0], [1], [0, 0, 1, 1], [], []>} : vector<8x32xf32>, vector<32x128xf32>, vector<8x128xf32> -> vector<8x128xf32>
    %6 = tpu.iota {dimensions = array<i32: 1>} : vector<8x128xi32>
    %c128_i32 = arith.constant 128 : i32
    %7 = arith.muli %arg1, %c128_i32 : i32
    %c16_i32 = arith.constant 16 : i32
    %8 = arith.subi %c16_i32, %7 : i32
    %9 = vector.broadcast %8 : i32 to vector<8x128xi32>
    %10 = arith.cmpi slt, %6, %9 : vector<8x128xi32>
    %cst_4 = arith.constant -1.000000e+30 : f32
    %11 = vector.broadcast %cst_4 : f32 to vector<8x128xf32>
    %12 = arith.select %10, %5, %11 : vector<8x128xi1>, vector<8x128xf32>
    %c0_5 = arith.constant 0 : index
    %c0_6 = arith.constant 0 : index
    %13 = vector.load %arg6[%c0_5, %c0_6] : memref<8x128xf32, #tpu.memory_space<vmem>>, vector<8x128xf32>
    tpu.vector_store %arg6[%c0_5, %c0_6], %12 {strides = array<i32>} : memref<8x128xf32, #tpu.memory_space<vmem>>, vector<8x128xf32>,
    %c0_7 = arith.constant 0 : index
    %c0_8 = arith.constant 0 : index
    %14 = vector.load %arg4[%c0_7, %c0_8] : memref<8x1xi32, #tpu.memory_space<vmem>>, vector<8x1xi32>
    %c128_i32_9 = arith.constant 128 : i32
    %15 = arith.muli %arg1, %c128_i32_9 : i32
    %16 = vector.broadcast %15 : i32 to vector<8x1xi32>
    %17 = arith.subi %14, %16 : vector<8x1xi32>
    %c0_10 = arith.constant 0 : index
    %c0_11 = arith.constant 0 : index
    %18 = vector.load %arg9[%c0_10, %c0_11] : memref<8x1xf32, #tpu.memory_space<vmem>>, vector<8x1xf32>
    %19 = vector.broadcast %17 : vector<8x1xi32> to vector<8x128xi32>
    %20 = arith.cmpi eq, %6, %19 : vector<8x128xi32>
    %cst_12 = arith.constant 0.000000e+00 : f32
    %21 = vector.broadcast %cst_12 : f32 to vector<8x128xf32>
    %22 = arith.select %20, %12, %21 : vector<8x128xi1>, vector<8x128xf32>
    %cst_13 = arith.constant dense<0.000000e+00> : vector<8xf32>
    %23 = vector.multi_reduction <add>, %22, %cst_13 [1] : vector<8x128xf32> to vector<8xf32>
    %24 = vector.shape_cast %23 : vector<8xf32> to vector<8x1xf32>
    %25 = arith.addf %18, %24 : vector<8x1xf32>
    %c0_14 = arith.constant 0 : index
    %c0_15 = arith.constant 0 : index
    %26 = vector.load %arg9[%c0_14, %c0_15] : memref<8x1xf32, #tpu.memory_space<vmem>>, vector<8x1xf32>
    tpu.vector_store %arg9[%c0_14, %c0_15], %25 {strides = array<i32>} : memref<8x1xf32, #tpu.memory_space<vmem>>, vector<8x1xf32>,
    %c0_16 = arith.constant 0 : index
    %c0_17 = arith.constant 0 : index
    %27 = vector.load %arg7[%c0_16, %c0_17] : memref<8x1xf32, #tpu.memory_space<vmem>>, vector<8x1xf32>
    %cst_18 = arith.constant dense<0xFF800000> : vector<8xf32>
    %28 = vector.multi_reduction <maximumf>, %12, %cst_18 [1] : vector<8x128xf32> to vector<8xf32>
    %29 = vector.shape_cast %28 : vector<8xf32> to vector<8x1xf32>
    %30 = arith.maximumf %27, %29 : vector<8x1xf32>
    %31 = arith.subf %27, %30 : vector<8x1xf32>
    %32 = math.exp %31 : vector<8x1xf32>
    %c0_19 = arith.constant 0 : index
    %c0_20 = arith.constant 0 : index
    %33 = vector.load %arg8[%c0_19, %c0_20] : memref<8x1xf32, #tpu.memory_space<vmem>>, vector<8x1xf32>
    %34 = arith.mulf %32, %33 : vector<8x1xf32>
    %35 = vector.broadcast %30 : vector<8x1xf32> to vector<8x128xf32>
    %36 = arith.subf %12, %35 : vector<8x128xf32>
    %37 = math.exp %36 : vector<8x128xf32>
    %cst_21 = arith.constant dense<0.000000e+00> : vector<8xf32>
    %38 = vector.multi_reduction <add>, %37, %cst_21 [1] : vector<8x128xf32> to vector<8xf32>
    %39 = vector.shape_cast %38 : vector<8xf32> to vector<8x1xf32>
    %40 = arith.addf %34, %39 : vector<8x1xf32>
    %c0_22 = arith.constant 0 : index
    %c0_23 = arith.constant 0 : index
    %41 = vector.load %arg8[%c0_22, %c0_23] : memref<8x1xf32, #tpu.memory_space<vmem>>, vector<8x1xf32>
    tpu.vector_store %arg8[%c0_22, %c0_23], %40 {strides = array<i32>} : memref<8x1xf32, #tpu.memory_space<vmem>>, vector<8x1xf32>,
    %c0_24 = arith.constant 0 : index
    %c0_25 = arith.constant 0 : index
    %42 = vector.load %arg7[%c0_24, %c0_25] : memref<8x1xf32, #tpu.memory_space<vmem>>, vector<8x1xf32>
    tpu.vector_store %arg7[%c0_24, %c0_25], %30 {strides = array<i32>} : memref<8x1xf32, #tpu.memory_space<vmem>>, vector<8x1xf32>,
    %c0_i32_26 = arith.constant 0 : i32
    %43 = arith.cmpi eq, %arg1, %c0_i32_26 : i32
    %44 = arith.extui %43 : i1 to i32
    %c0_i32_27 = arith.constant 0 : i32
    %45 = arith.cmpi ne, %44, %c0_i32_27 : i32
    scf.if %45 {
      %c0_28 = arith.constant 0 : index
      %c0_29 = arith.constant 0 : index
      %46 = vector.load %arg7[%c0_28, %c0_29] : memref<8x1xf32, #tpu.memory_space<vmem>>, vector<8x1xf32>
      %c0_30 = arith.constant 0 : index
      %c0_31 = arith.constant 0 : index
      %47 = vector.load %arg8[%c0_30, %c0_31] : memref<8x1xf32, #tpu.memory_space<vmem>>, vector<8x1xf32>
      %48 = math.log %47 : vector<8x1xf32>
      %49 = arith.addf %46, %48 : vector<8x1xf32>
      %c0_32 = arith.constant 0 : index
      %c0_33 = arith.constant 0 : index
      %50 = vector.load %arg9[%c0_32, %c0_33] : memref<8x1xf32, #tpu.memory_space<vmem>>, vector<8x1xf32>
      %51 = arith.subf %49, %50 : vector<8x1xf32>
      %c0_34 = arith.constant 0 : index
      %c0_35 = arith.constant 0 : index
      %52 = vector.load %arg5[%c0_34, %c0_35] : memref<8x1xf32, #tpu.memory_space<vmem>>, vector<8x1xf32>
      tpu.vector_store %arg5[%c0_34, %c0_35], %51 {strides = array<i32>} : memref<8x1xf32, #tpu.memory_space<vmem>>, vector<8x1xf32>,
    } else {
    }
    return
  }
  func.func @transform_0(%arg0: i32, %arg1: i32) -> (i32, i32) {
    %c0_i32 = arith.constant 0 : i32
    %c0_i32_0 = arith.constant 0 : i32
    return %arg0, %c0_i32 : i32, i32
  }
  func.func @transform_1(%arg0: i32, %arg1: i32) -> (i32, i32) {
    %c0_i32 = arith.constant 0 : i32
    %c0_i32_0 = arith.constant 0 : i32
    return %c0_i32, %arg1 : i32, i32
  }
  func.func @transform_2(%arg0: i32, %arg1: i32) -> (i32, i32) {
    %c0_i32 = arith.constant 0 : i32
    %c0_i32_0 = arith.constant 0 : i32
    return %arg0, %c0_i32 : i32, i32
  }
  func.func @transform_3(%arg0: i32, %arg1: i32) -> (i32, i32) {
    %c0_i32 = arith.constant 0 : i32
    %c0_i32_0 = arith.constant 0 : i32
    return %arg0, %c0_i32 : i32, i32
  }
  func.func @transform_4(%arg0: i32, %arg1: i32) -> (i32, i32) {
    %c0_i32 = arith.constant 0 : i32
    return %arg0, %arg1 : i32, i32
  }
}

</mosaic_0001>

<bundles_post_ra>
// kernel: tpu_custom_call.1
= control target key start
LH: loop header
LB: loop body
LE: loop exit
PB: predicated region body
PF: predicated region fallthrough
CT: control target
= control target key end

     0   :  { %10 = vsyncpa [#allocation7], 0  ;;  %s340_s0 = inlined_call_operand.vmem [shape: f32[8,32], index: 0, kind: input, shape index: {}]   ;;  %s341_s1 = inlined_call_operand.hbm [shape: f32[32,128], index: 1, kind: input, shape index: {}]   ;;  %s342_s2 = inlined_call_operand.vmem [shape: s32[8,1], index: 2, kind: input, shape index: {}]   ;;  %s343_s3 = inlined_call_operand.vmem [shape: f32[8,1], index: 3, kind: output, shape index: {0}]   ;;  %s344_s4 = inlined_call_operand.hbm [shape: f32[8,128], index: 4, kind: output, shape index: {1}]  }
   0x1   :  { %11 = vsyncpa [#allocation8], 0  ;;  %s282_s15 = smov [#allocation6]  }
   0x2   :  { %s19_s16 = sshll.u32 %s282_s15, 4  ;;  %s20_s16 = int_to_ptr.vmem [resolvable:$true] %s19_s16 }
   0x3   :  { %s246_s17 = scalar_lea.vmem %s20_s16, 512  ;;  %p251_p1 = scmp.lt.s32.totalorder %s20_s16, %s20_s16 }
   0x4   :  { %p247_p0 = scmp.ne.s32.totalorder %s20_s16, %s246_s17  ;;  %p252_p2 = scmp.lt.s32.totalorder %s246_s17, %s246_s17 }
   0x6   :  { %p253_p3 = por %p252_p2, %p251_p1 }
   0x8   :  { %p254_p4 = pnand %p253_p3, %p247_p0 }
   0xa   :  { %257 = shalt.err (!%p254_p4)
}
   0xb   :  { %s283_s18 = smov 128   ;;  %s284_s19 = smov 8  }
   0xc   :  { %25 = dma.hbm_to_vmem [thread:$0]  %s341_s1, 512, %s20_s16, [#allocation7], %s283_s18, %s283_s18, %s284_s19  }
   0xd   :  { %278 = dma.done.wait [#allocation7], 512  }
   0xe   :  { %279 = vsyncadd [#allocation7], 4294966784  ;;  %v35_v0 = vld [vmem:[%s340_s0] sm:$0xff]  ;;  %vm37_vm0 = vcmask 261120   ;;  %v285_v3 = vmov 0.0   ;;  %v54_v4 = vld [vmem:[#allocation6 + $0x18] sm:$0xff]  ;;  %v129_v15 = vlaneseq }
   0xf   :  { %v36_v1 = vmul.f32 %v35_v0, %v35_v0  ;;  %209 = vmatprep.subr.mxu0 %v285_v3  ;;  %v53_v5 = vld [vmem:[#allocation6 + $0x10] sm:$0xff]  ;;  %vm286_vm1 = vmmov 0   ;;  %v52_v6 = vld [vmem:[#allocation6 + $0x8] sm:$0xff]  ;;  %v51_v7 = vld [vmem:[#allocation6] sm:$0xff]  ;;  %vm46_vm2 = vcmask 7168   ;;  %v288_v20 = vmov 0  }
  0x10   :  { %210 = vmatpush3.msra.mxu0 %v54_v4  ;;  %217 = vmatprep.mubr.msk.f32.mxu0 %vm286_vm1, %v285_v3  ;;  %v287_v14 = vmov -1e+30   ;;  %48 = vst.msk [vmem:[#allocation3] sm:$0xff] %vm46_vm2, %v285_v3  ;;  %49 = vst.msk [vmem:[#allocation4] sm:$0xff] %vm46_vm2, %v285_v3  ;;  %v130_v16 = vand.u32 127, %v129_v15  ;;  %v137_v25 = vld [vmem:[%s342_s2] sm:$0xff] }
  0x11   :  { %v38_v2 = vsel %vm37_vm0, %v36_v1, 0.0  ;;  %211 = vmatprep.subr.mxu0 %v285_v3  ;;  %47 = vst.msk [vmem:[#allocation2] sm:$0xff] %vm46_vm2, %v287_v14  ;;  %228 = vset.pattern.permute.xlu1 %v288_v20  ;;  %s289_s24 = smov [#allocation9]  }
  0x12   :  { %39 = vadd.xlane.f32.xlu0 %v38_v2  ;;  %212 = vmatpush3.msra.mxu0 %v53_v5  ;;  %vm134_vm3 = vcmp.lt.s32.totalorder %v130_v16, 16  ;;  %s192_s25 = sshll.u32 %s289_s24, 4  ;;  %s193_s25 = int_to_ptr.vmem [resolvable:$true] %s192_s25 }
  0x13   :  { %213 = vmatprep.subr.mxu0 %v285_v3  ;;  %229 = vset.pattern.permute.xlu0 %v288_v20  ;;  %s258_s26 = scalar_lea.vmem %s193_s25, 128  ;;  %p263_p6 = scmp.lt.s32.totalorder %s193_s25, %s193_s25 }
  0x14   :  { %214 = vmatpush3.msra.mxu0 %v52_v6  ;;  %p259_p5 = scmp.ne.s32.totalorder %s193_s25, %s258_s26  ;;  %p264_p7 = scmp.lt.s32.totalorder %s258_s26, %s258_s26 }
  0x15   :  { %215 = vmatprep.subr.mxu0 %v285_v3 }
  0x16   :  { %216 = vmatpush3.msra.mxu0 %v51_v7  ;;  %p265_p8 = por %p264_p7, %p263_p6 }
  0x18   :  { %v151_v21 = vld [vmem:[#allocation2] sm:$0xff]  ;;  %p266_p9 = pnand %p265_p8, %p259_p5 }
  0x9b   :  { %v40_v8 = vpop.xlane.xlu0 %39 }
  0x9c   :  { %v41_v9 = vmax.f32 %v40_v8, 1e-24 }
  0x9e   :  { %230 = vrsqrt.f32 %v41_v9 }
  0xab   :  { %v231_v10 = vpop.eup %230 }
  0xac   :  { %v43_v11 = vmul.f32 20.0, %v231_v10 }
  0xae   :  { %v44_v12 = vmul.f32 %v43_v11, %v35_v0 }
  0xb0   :  { %45 = vst.msk [vmem:[#allocation5] sm:$0xff] %vm37_vm0, %v44_v12 }
  0xb7   :  { %v50_v13 = vld [vmem:[#allocation5] sm:$0xff] }
  0xb8   :  { %218 = vmatmul.mubr.msk.f32.vlgmr.msra.gmra.mxu0 %vm37_vm0, %v50_v13 }
 0x178   :  { %v125_v17 = vpop.f32.mrf.mxu0 }
 0x179   :  { %v135_v18 = vsel %vm134_vm3, %v125_v17, -1e+30 }
 0x17a   :  { %136 = vst [vmem:[#allocation9] sm:$0xff] %v135_v18  ;;  %152 = vmax.xlane.f32.xlu0 %v135_v18  ;;  %v219_v19 = vpop.f32.mrf.mxu0 }
 0x203   :  { %v153_v22 = vpop.xlane.xlu0 %152 }
 0x204   :  { %v154_v23 = vmax.f32 %v151_v21, %v153_v22 }
 0x206   :  { %v155_v24 = vsub.f32 %v151_v21, %v154_v23  ;;  %172 = vst.msk [vmem:[#allocation2] sm:$0xff] %vm46_vm2, %v154_v23  ;;  %162 = vperm.xlu1 %228, %v154_v23  }
 0x20a   :  { %142 = vperm.xlu1 %228, %v137_v25  }
 0x281   :  { %v163_v26 = vpop.permute.xlu1 %162 }
 0x282   :  { %v165_v27 = vsub.f32 %v135_v18, %v163_v26 }
 0x284   :  { %v166_v28 = vmul.f32 1.442695, %v165_v27 }
 0x285   :  { %v143_v29 = vpop.permute.xlu1 %142 }
 0x286   :  { %232 = vpow2.f32 %v166_v28  ;;  %vm144_vm4 = vcmp.eq.s32.totalorder %v130_v16, %v143_v29 }
 0x287   :  { %v145_v30 = vsel %vm144_vm4, %v135_v18, 0.0 }
 0x288   :  { %146 = vadd.xlane.f32.xlu1 %v145_v30 }
 0x293   :  { %v233_v31 = vpop.eup %232 }
 0x294   :  { %168 = vadd.xlane.f32.xlu0 %v233_v31 }
 0x295   :  { %269 = shalt.err (!%p266_p9)
}
 0x296   :  { %195 = dma.vmem_to_hbm [thread:$0]  %s193_s25, 128, %s344_s4, [#allocation8]   ;;  %v156_v32 = vmul.f32 1.442695, %v155_v24  ;;  %v140_v33 = vld [vmem:[#allocation4] sm:$0xff]  ;;  %v158_v37 = vld [vmem:[#allocation3] sm:$0xff] }
 0x297   :  { %v176_v44 = vld [vmem:[#allocation2] sm:$0xff] }
 0x298   :  { %234 = vpow2.f32 %v156_v32 }
 0x2a5   :  { %v235_v36 = vpop.eup %234 }
 0x2a6   :  { %v159_v38 = vmul.f32 %v235_v36, %v158_v37 }
 0x311   :  { %v147_v34 = vpop.xlane.xlu1 %146 }
 0x312   :  { %v148_v35 = vadd.f32 %v147_v34, %v140_v33 }
 0x314   :  { %150 = vst.msk [vmem:[#allocation4] sm:$0xff] %vm46_vm2, %v148_v35 }
 0x31b   :  { %v181_v46 = vld [vmem:[#allocation4] sm:$0xff] }
 0x31d   :  { %v169_v39 = vpop.xlane.xlu0 %168 }
 0x31e   :  { %v170_v40 = vadd.f32 %v169_v39, %v159_v38 }
 0x320   :  { %171 = vst.msk [vmem:[#allocation3] sm:$0xff] %vm46_vm2, %v170_v40 }
 0x327   :  { %v177_v41 = vld [vmem:[#allocation3] sm:$0xff] }
 0x328   :  { %236 = vlog2.f32 %v177_v41 }
 0x335   :  { %v237_v42 = vpop.eup %236 }
 0x336   :  { %v179_v43 = vmul.f32 0.6931472, %v237_v42 }
 0x338   :  { %v180_v45 = vadd.f32 %v179_v43, %v176_v44 }
 0x33a   :  { %v182_v47 = vsub.f32 %v180_v45, %v181_v46 }
 0x33c   :  { %183 = vst.msk [vmem:[%s343_s3] sm:$0xff] %vm46_vm2, %v182_v47 }
 0x33d   :  { %280 = dma.done.wait [#allocation8], 128  }
 0x33e   :  { %281 = vsyncadd [#allocation8], 4294967168 }
 0x33f   :  { %201 = vsyncpa [#allocation7], 1 }
 0x340   :  { %202 = vsyncpa [#allocation8], 1 }

</bundles_post_ra>
